<compile_context>
chip_gen: v5e
topology: v5e:2x2
jax: 0.10.0
libtpu: 0.0.40
codegen_flags: <defaults>
</compile_context>

<pallas_src>
import jax
import jax.numpy as jnp
from jax.experimental import pallas as pl
from jax.experimental.pallas import tpu as pltpu

LANE = 128            # vreg lane width
SUBLANES = 8          # vreg sublane count (f32)
BLOCK_ROWS_CAP = 512  # rows per grid step: 512x128 f32 = 256 KiB per block


def _lsgan_sum_kernel(label_ref, w_ref, x_ref, out_ref, acc_ref):
    """label_ref: SMEM (1,) f32 target label      (scalar prefetch)
    w_ref:     SMEM (num_blocks,) f32, per-block weight = 1/numel of its scale
    x_ref:     VMEM (BLOCK_ROWS, 128) tile of the concatenated predictions
    out_ref:   (1, 1) f32 result = sum_i MSE(pred_i, label)
    acc_ref:   (8, 128) f32 single-vreg accumulator (VPU-only per step)."""
    i = pl.program_id(0)

    @pl.when(i == 0)
    def _():
        acc_ref[...] = jnp.zeros_like(acc_ref)

    d = x_ref[...].astype(jnp.float32) - label_ref[0]
    wsq = (d * d) * w_ref[i]
    # Vertical (cross-vreg) reduction into a single vreg: pure VPU adds,
    # no XLU work and only one vreg of accumulator store traffic per step.
    acc_ref[...] += wsq.reshape(-1, SUBLANES, LANE).sum(axis=0)

    @pl.when(i == pl.num_programs(0) - 1)
    def _():
        # Single cross-lane/cross-sublane reduce, once, in the epilogue.
        out_ref[...] = jnp.sum(acc_ref[...], keepdims=True)


def _round_up(x, m):
    return -(-x // m) * m


@jax.jit
def _lsgan_loss(preds, label):
    """sum_i MSELoss(pred_i, full_like(pred_i, label)) in one pallas_call.

    `preds` is a tuple of arrays (static shapes), `label` is a traced f32
    scalar (so real/fake reuse the same compiled kernel)."""
    # Keep the predictions in their native floating dtype (bf16 stays bf16).
    dtype = jnp.result_type(*preds)
    if not jnp.issubdtype(dtype, jnp.floating):
        dtype = jnp.float32
    itemsize = jnp.dtype(dtype).itemsize
    row_align = max(SUBLANES, SUBLANES * (4 // itemsize))  # 8 f32 / 16 bf16 / 32 8-bit

    # Rows needed per scale (aligned); block size adapts to the largest scale
    # but never exceeds the cap.
    rows_aligned = [_round_up(max(1, -(-p.size // LANE)), row_align)
                    for p in preds]
    block_rows = min(_round_up(BLOCK_ROWS_CAP, row_align), max(rows_aligned))

    label_f32 = jnp.asarray(label, jnp.float32)
    pad_val = label_f32.astype(dtype)

    slabs, weights = [], []
    for p in preds:
        numel = p.size
        rows_pad = _round_up(max(1, -(-numel // LANE)), block_rows)
        flat = p.reshape(-1).astype(dtype)
        pad_amt = rows_pad * LANE - numel
        if pad_amt:
            # Tail-pad with the target label => padded elements add 0.
            flat = jnp.pad(flat, (0, pad_amt), constant_values=pad_val)
        slabs.append(flat.reshape(rows_pad, LANE))
        nblk = rows_pad // block_rows
        weights.append(jnp.full((nblk,), 1.0 / numel, dtype=jnp.float32))

    x2d = slabs[0] if len(slabs) == 1 else jnp.concatenate(slabs, axis=0)
    w_arr = weights[0] if len(weights) == 1 else jnp.concatenate(weights)
    label_arr = label_f32.reshape(1)

    num_blocks = x2d.shape[0] // block_rows

    out = pl.pallas_call(
        _lsgan_sum_kernel,
        out_shape=jax.ShapeDtypeStruct((1, 1), jnp.float32),
        grid_spec=pltpu.PrefetchScalarGridSpec(
            num_scalar_prefetch=2,
            grid=(num_blocks,),
            in_specs=[pl.BlockSpec((block_rows, LANE),
                                   lambda i, lbl, w: (i, 0))],
            out_specs=pl.BlockSpec((1, 1), lambda i, lbl, w: (0, 0)),
            scratch_shapes=[pltpu.VMEM((SUBLANES, LANE), jnp.float32)],
        ),
        compiler_params=pltpu.CompilerParams(
            dimension_semantics=("arbitrary",)),
    )(label_arr, w_arr, x2d)
    return out[0, 0]


class GANLossPallas:
    """JAX/Pallas port of multi_gan_loss.GANLoss (use_lsgan=True path)."""

    def __init__(self, use_lsgan=True, target_real_label=1.0,
                 target_fake_label=0.0):
        self.real_label = float(target_real_label)
        self.fake_label = float(target_fake_label)
        if not use_lsgan:
            # TODO(synk): BCELoss branch (use_lsgan=False) not ported; the
            # module defaults to least-square (MSE), which is what we port.
            raise NotImplementedError("only use_lsgan=True is supported")

    def __call__(self, input, target_is_real):
        label = jnp.float32(self.real_label if target_is_real
                            else self.fake_label)
        if isinstance(input[0], (list, tuple)):
            # Multi-scale discriminator: sum of per-scale MSE losses,
            # fused into a single pallas_call.
            preds = tuple(input_i[-1] for input_i in input)
        else:
            preds = (input[-1],)
        return _lsgan_loss(preds, label)


def _ref_loss(input, target_is_real, real_label=1.0, fake_label=0.0):
    """Pure-JAX reference mirroring the PyTorch forward (MSELoss)."""
    label = real_label if target_is_real else fake_label
    if isinstance(input[0], (list, tuple)):
        loss = jnp.float32(0.0)
        for input_i in input:
            pred = input_i[-1].astype(jnp.float32)
            loss = loss + jnp.mean((pred - label) ** 2)
        return loss
    pred = input[-1].astype(jnp.float32)
    return jnp.mean((pred - label) ** 2)


if __name__ == "__main__":
    key = jax.random.PRNGKey(0)
    k1, k2, k3, k4, k5 = jax.random.split(key, 5)

    # Multi-scale discriminator outputs: list of per-scale feature lists,
    # last element of each is the patch prediction (NCHW).
    d_scale0 = [jax.random.normal(k1, (2, 4, 16, 16), jnp.float32),
                jax.random.normal(k2, (2, 1, 16, 16), jnp.float32)]
    d_scale1 = [jax.random.normal(k3, (2, 4, 8, 8), jnp.float32),
                jax.random.normal(k4, (2, 1, 8, 8), jnp.float32)]
    multi_input = [d_scale0, d_scale1]

    # Single-discriminator case: plain list of tensors, last is the prediction.
    single_input = [jax.random.normal(k5, (2, 1, 14, 14), jnp.float32)]

    # Native-dtype path: bf16 prediction, upcast happens inside the kernel.
    single_bf16 = [single_input[0].astype(jnp.bfloat16)]

    criterion = GANLossPallas(use_lsgan=True)

    loss_real = jax.block_until_ready(criterion(multi_input, True))
    loss_fake = jax.block_until_ready(criterion(multi_input, False))
    loss_single = jax.block_until_ready(criterion(single_input, True))
    loss_bf16 = jax.block_until_ready(criterion(single_bf16, False))

    ref_real = _ref_loss(multi_input, True)
    ref_fake = _ref_loss(multi_input, False)
    ref_single = _ref_loss(single_input, True)
    ref_bf16 = _ref_loss(single_bf16, False)

    assert jnp.allclose(loss_real, ref_real, rtol=1e-5, atol=1e-5), (loss_real, ref_real)
    assert jnp.allclose(loss_fake, ref_fake, rtol=1e-5, atol=1e-5), (loss_fake, ref_fake)
    assert jnp.allclose(loss_single, ref_single, rtol=1e-5, atol=1e-5), (loss_single, ref_single)
    assert jnp.allclose(loss_bf16, ref_bf16, rtol=1e-4, atol=1e-5), (loss_bf16, ref_bf16)

    print("KERNEL_OK")
</pallas_src>

<mosaic_0001>
module attributes {stable_mosaic.version = 11 : i64} {
  func.func @_lsgan_sum_kernel(%arg0: i32, %arg1: memref<1xf32, #tpu.memory_space<smem>>, %arg2: memref<2xf32, #tpu.memory_space<smem>>, %arg3: memref<8x128xf32, #tpu.memory_space<vmem>>, %arg4: memref<1x1xf32, #tpu.memory_space<vmem>>, %arg5: memref<8x128xf32, #tpu.memory_space<vmem>>) attributes {dimension_semantics = [#tpu.dimension_semantics<arbitrary>], iteration_bounds = array<i64: 2>, scalar_prefetch = 2 : i64, scratch_operands = 1 : i64, tpu.core_type = #tpu.core_type<tc>, window_params = [{transform_indices = @transform_0, window_bounds = array<i64: 8, 128>}, {pipeline_mode = #tpu.pipeline_mode<synchronous>, transform_indices = @transform_1, window_bounds = array<i64: 1, 1>}]} {
    %c0_i32 = arith.constant 0 : i32
    %0 = arith.cmpi eq, %arg0, %c0_i32 : i32
    %1 = arith.extui %0 : i1 to i32
    %c0_i32_0 = arith.constant 0 : i32
    %2 = arith.cmpi ne, %1, %c0_i32_0 : i32
    scf.if %2 {
      %cst_8 = arith.constant 0.000000e+00 : f32
      %20 = vector.broadcast %cst_8 : f32 to vector<8x128xf32>
      %c0_9 = arith.constant 0 : index
      %c0_10 = arith.constant 0 : index
      %21 = vector.load %arg5[%c0_9, %c0_10] : memref<8x128xf32, #tpu.memory_space<vmem>>, vector<8x128xf32>
      tpu.vector_store %arg5[%c0_9, %c0_10], %20 {strides = array<i32>} : memref<8x128xf32, #tpu.memory_space<vmem>>, vector<8x128xf32>,
    } else {
    }
    %c0 = arith.constant 0 : index
    %c0_1 = arith.constant 0 : index
    %3 = vector.load %arg3[%c0, %c0_1] : memref<8x128xf32, #tpu.memory_space<vmem>>, vector<8x128xf32>
    %c0_2 = arith.constant 0 : index
    %4 = memref.load %arg1[%c0_2] : memref<1xf32, #tpu.memory_space<smem>>
    %5 = vector.broadcast %4 : f32 to vector<8x128xf32>
    %6 = arith.subf %3, %5 : vector<8x128xf32>
    %7 = arith.mulf %6, %6 : vector<8x128xf32>
    %8 = arith.index_cast %arg0 : i32 to index
    %9 = memref.load %arg2[%8] : memref<2xf32, #tpu.memory_space<smem>>
    %10 = vector.broadcast %9 : f32 to vector<8x128xf32>
    %11 = arith.mulf %7, %10 : vector<8x128xf32>
    %c0_3 = arith.constant 0 : index
    %c0_4 = arith.constant 0 : index
    %12 = vector.load %arg5[%c0_3, %c0_4] : memref<8x128xf32, #tpu.memory_space<vmem>>, vector<8x128xf32>
    %13 = vector.shape_cast %11 : vector<8x128xf32> to vector<1x8x128xf32>
    %cst = arith.constant dense<0.000000e+00> : vector<8x128xf32>
    %14 = vector.multi_reduction <add>, %13, %cst [0] : vector<1x8x128xf32> to vector<8x128xf32>
    %15 = arith.addf %12, %14 : vector<8x128xf32>
    %c0_5 = arith.constant 0 : index
    %c0_6 = arith.constant 0 : index
    %16 = vector.load %arg5[%c0_5, %c0_6] : memref<8x128xf32, #tpu.memory_space<vmem>>, vector<8x128xf32>
    tpu.vector_store %arg5[%c0_5, %c0_6], %15 {strides = array<i32>} : memref<8x128xf32, #tpu.memory_space<vmem>>, vector<8x128xf32>,
    %c1_i32 = arith.constant 1 : i32
    %17 = arith.cmpi eq, %arg0, %c1_i32 : i32
    %18 = arith.extui %17 : i1 to i32
    %c0_i32_7 = arith.constant 0 : i32
    %19 = arith.cmpi ne, %18, %c0_i32_7 : i32
    scf.if %19 {
      %c0_8 = arith.constant 0 : index
      %c0_9 = arith.constant 0 : index
      %20 = vector.load %arg5[%c0_8, %c0_9] : memref<8x128xf32, #tpu.memory_space<vmem>>, vector<8x128xf32>
      %21 = vector.shape_cast %20 : vector<8x128xf32> to vector<1x8x128xf32>
      %cst_10 = arith.constant dense<0.000000e+00> : vector<1xf32>
      %22 = vector.multi_reduction <add>, %21, %cst_10 [1, 2] : vector<1x8x128xf32> to vector<1xf32>
      %23 = vector.shape_cast %22 : vector<1xf32> to vector<1x1x1xf32>
      %24 = vector.extract %23[0, 0, 0] : f32 from vector<1x1x1xf32>
      %25 = vector.broadcast %24 : f32 to vector<1x1xf32>
      %c0_11 = arith.constant 0 : index
      %c0_12 = arith.constant 0 : index
      %26 = vector.load %arg4[%c0_11, %c0_12] : memref<1x1xf32, #tpu.memory_space<vmem>>, vector<1x1xf32>
      tpu.vector_store %arg4[%c0_11, %c0_12], %25 {strides = array<i32>} : memref<1x1xf32, #tpu.memory_space<vmem>>, vector<1x1xf32>,
    } else {
    }
    return
  }
  func.func @transform_0(%arg0: i32, %arg1: memref<1xf32, #tpu.memory_space<smem>>, %arg2: memref<2xf32, #tpu.memory_space<smem>>) -> (i32, i32) {
    %c0_i32 = arith.constant 0 : i32
    %c0_i32_0 = arith.constant 0 : i32
    return %arg0, %c0_i32 : i32, i32
  }
  func.func @transform_1(%arg0: i32, %arg1: memref<1xf32, #tpu.memory_space<smem>>, %arg2: memref<2xf32, #tpu.memory_space<smem>>) -> (i32, i32) {
    %c0_i32 = arith.constant 0 : i32
    %c0_i32_0 = arith.constant 0 : i32
    %c0_i32_1 = arith.constant 0 : i32
    return %c0_i32, %c0_i32_0 : i32, i32
  }
}

</mosaic_0001>

<bundles_post_ra>
// kernel: _lsgan_loss.1
= control target key start
LH: loop header
LB: loop body
LE: loop exit
PB: predicated region body
PF: predicated region fallthrough
CT: control target
= control target key end

     0   :  { %s277_s17 = smov [#allocation5]   ;;  %s331_s0 = inlined_call_operand.<no memory space> [shape: f32[1], index: 0, kind: input, shape index: {}]   ;;  %s332_s1 = inlined_call_operand.vmem [shape: f32[2], index: 1, kind: input, shape index: {}]   ;;  %s333_s2 = inlined_call_operand.vmem [shape: f32[16,128], index: 2, kind: input, shape index: {}]   ;;  %s334_s3 = inlined_call_operand.hbm [shape: f32[1,1], index: 3, kind: output, shape index: {}]  }
   0x1   :  { %8 = sst [smem:[#allocation4]] %s331_s0  ;;  %s10_s16 = sshll.u32 %s332_s1, 4  ;;  %s11_s16 = int_to_ptr.vmem [resolvable:$true] %s10_s16 }
   0x2   :  { %13 = dma.vmem_to_smem %s11_s16, 16, %s277_s17, [#allocation3] }
   0x3   :  { %267 = dma.done.wait [#allocation3], 16 }
   0x4   :  { %268 = vsyncadd [#allocation3], 4294967280 }
   0x5   :  { %16 = sfence }
   0x6   :  { %17 = vsyncpa [#allocation7], 0  ;;  %s306_s18 = smov 0  }
   0x7 LB: > { %s312_s0 = sadd.s32 4294967295, %s275_s18   ;;  %p196_p0 = scmp.ge.s32.totalorder %s275_s18, 1  ;;  %s275_s18 = sphi %s306_s18, %s23_s18  }
   0x8   : > { %p93_p1 = scmp.lt.s32.totalorder %s275_s18, 3 }
   0xa   : > { %p94_p2 = pnand %p196_p0, %p93_p1 }
   0xb   : > { %p107_p3 = scmp.lt.s32.totalorder (!%p94_p2), %s312_s0, 1  ;;  %p198_p4 = scmp.ne.s32.totalorder (!%p94_p2), %s312_s0, 0 }
   0xc   : > { %97 = sbr.rel (%p94_p2) target bundleno = 233 (0xe9), region = 24 }
  0x11   : > { %s108_s1 = scalar_select %p107_p3, %s312_s0, 1 }
  0x12   : > { %114 = sbr.rel (%p198_p4) target bundleno = 25 (0x19), region = 28 }
  0x13   : > { %s197_s19 = sshll.u32 %s108_s1, 3 }
  0x14   : > { %s110_s22 = scalar_lea.vmem %s333_s2, %s197_s19 }
  0x17   : > { %v278_v0 = vmov 0.0  }
  0x18   : > { %115 = vst [vmem:[#allocation2] sm:$0xff] %v278_v0 }
  0x19 PF: > { %s117_s23 = sld [smem:[#allocation4]]  ;;  %v116_v1 = vld [vmem:[%s110_s22] sm:$0xff]  ;;  %p199_p5 = scmp.ne.s32.totalorder %s312_s0, 1 }
  0x1a   : > { %s121_s24 = sld [smem:[#allocation5 + %s312_s0]] }
  0x1f   : > { %v118_v2 = vstv %s117_s23  ;;  %v124_v6 = vld [vmem:[#allocation2] sm:$0xff] }
  0x20   : > { %v119_v3 = vsub.f32 %v116_v1, %v118_v2  ;;  %v122_v4 = vstv %s121_s24 }
  0x22   : > { %v120_v5 = vmul.f32 %v119_v3, %v119_v3 }
  0x24   : > { %v123_v7 = vmul.f32 %v122_v4, %v120_v5  ;;  %131 = sbr.rel (%p199_p5) target bundleno = 228 (0xe4), region = 32 }
  0x26   : > { %v126_v8 = vadd.f32 %v124_v6, %v123_v7 }
  0x28   : > { %127 = vst [vmem:[#allocation2] sm:$0xff] %v126_v8 }
  0x29   : > { %vm143_vm0 = vcmask 0  }
  0x2f   : > { %v132_v9 = vld [vmem:[#allocation2] sm:$0xff] }
  0x30   : > { %133 = vadd.xlane.f32.xlu0 %v132_v9 }
  0xa3   : > { %v134_v10 = vpop.xlane.xlu0 %133 }
  0xa4   : > { %v135_v11 = vrot.slane %v134_v10, 4 }
  0xa6   : > { %v136_v12 = vadd.f32 %v135_v11, %v134_v10 }
  0xa8   : > { %v137_v13 = vrot.slane %v136_v12, 2 }
  0xaa   : > { %v138_v14 = vadd.f32 %v137_v13, %v136_v12 }
  0xac   : > { %v139_v15 = vrot.slane %v138_v14, 1 }
  0xae   : > { %v140_v16 = vadd.f32 %v139_v15, %v138_v14 }
  0xb0   : > { %204 = vpush %v140_v16 }
  0xe1   : > { %s205_s25 = spop %204 }
  0xe2   : > { %v142_v17 = vstv %s205_s25 }
  0xe3   : > { %144 = vst.msk [vmem:[#allocation6] sm:$0x1] %vm143_vm0, %v142_v17 }
  0xe4 PF: > { %p210_p6 = scmp.eq.s32.totalorder %s312_s0, 1  ;;  %s279_s26 = smov [#allocation6]  }
  0xe5   : > { %s151_s27 = sshll.u32 %s279_s26, 4  ;;  %s153_s30 = sshll.u32 %s334_s3, 4  ;;  %s152_s27 = int_to_ptr.vmem [resolvable:$true] %s151_s27  ;;  %s154_s30 = int_to_ptr.hbm [resolvable:$true] %s153_s30 }
  0xe6   : > { %207 = dma.vmem_to_hbm [thread:$0]  (%p210_p6), %s152_s27, 16, %s154_s30, [#allocation7]  }
  0xe7   : > { %270 = dma.done.wait (%p210_p6), [#allocation7], 16  }
  0xe8   : > { %272 = vsyncadd (%p210_p6), [#allocation7], 4294967280 }
  0xe9 PF: > { %s23_s18 = sadd.s32 1, %s275_s18  }
  0xea   : > { %p20_p7 = scmp.ge.s32.totalorder %s23_s18, 4  }
  0xec   :  { %22 = sbr.rel (!%p20_p7) target bundleno = 7 (0x7), region = 59 }
  0xf1   :  { %167 = vsyncpa [#allocation7], 1 }
  0xf2   :  { %169 = vsyncpa [#allocation7 + $0x1], 1 }

</bundles_post_ra>
